<compile_context>
chip_gen: v6e
topology: v6e:2x2x1
jax: 0.10.0
libtpu: 0.0.40
codegen_flags: <defaults>
</compile_context>

<pallas_src>
import jax
import jax.numpy as jnp
from jax.experimental import pallas as pl
from jax.experimental.pallas import tpu as pltpu

BN_EPS = 1e-5


def _make_folding_kernel(num_hidden):
    """Kernel body: split first conv over (grids, codewords), then fused
    (conv + BN + ReLU) x num_hidden-1 and a final conv, all in NCW layout."""

    def kernel(*refs):
        g_ref, c_ref = refs[0], refs[1]           # (Cg, TN), (Cc, TN)
        out_ref = refs[-1]                        # (Cout, TN)
        params = refs[2:-1]

        wg = params[0][...]                       # (C1, Cg)
        wc = params[1][...]                       # (C1, Cc)
        # torch.cat([grids, codewords], dim=1) followed by conv1 == split matmul
        y = (jnp.dot(wg, g_ref[...], preferred_element_type=jnp.float32)
             + jnp.dot(wc, c_ref[...], preferred_element_type=jnp.float32))

        if num_hidden == 0:                       # single output conv, no BN
            b = params[2][...]                    # (Cout, 1) f32
            out_ref[...] = (y + b).astype(out_ref.dtype)
            return

        # first hidden layer: fused BN(eval) + ReLU, all f32 elementwise
        s = params[2][...]                        # (C1, 1) f32
        t = params[3][...]                        # (C1, 1) f32
        x = jnp.maximum(y * s + t, 0.0)

        p = 4
        for _ in range(num_hidden - 1):
            w = params[p][...]                    # (Cout_l, Cin_l)
            s = params[p + 1][...]
            t = params[p + 2][...]
            p += 3
            y = jnp.dot(w, x.astype(w.dtype), preferred_element_type=jnp.float32)
            x = jnp.maximum(y * s + t, 0.0)

        w_out = params[p][...]                    # (Cout, Cin_last)
        b_out = params[p + 1][...]                # (Cout, 1) f32
        out_ref[...] = (jnp.dot(w_out, x.astype(w_out.dtype),
                                preferred_element_type=jnp.float32)
                        + b_out).astype(out_ref.dtype)

    return kernel


def _fold_bn(lp):
    """Fold conv bias + eval-mode BatchNorm into per-channel (scale, shift)."""
    inv_std = 1.0 / jnp.sqrt(lp["running_var"].astype(jnp.float32) + BN_EPS)
    scale = (lp["gamma"] * inv_std).astype(jnp.float32)
    shift = ((lp["b"] - lp["running_mean"]) * scale + lp["beta"]).astype(jnp.float32)
    return scale.reshape(-1, 1), shift.reshape(-1, 1)
    # TODO(synk): training-mode BatchNorm (batch statistics) not implemented;
    # kernel uses eval-mode (running-stat) BN semantics.


def _default_stream_dtype():
    """bf16 activation streaming on v6e/v7x (HBM-bound win); f32 on v5e/older."""
    try:
        kind = jax.devices()[0].device_kind.lower()
    except Exception:
        return jnp.float32
    for old in ("v2", "v3", "v4", "v5"):
        if old in kind:
            return jnp.float32
    return jnp.bfloat16


def folding_layer_forward(grids, codewords, layer_params, *,
                          tile_n=1024, stream_dtype=None):
    """Pallas forward of FoldingLayer.

    grids:     [B, Cg, N] f32
    codewords: [B, Cc, N] f32
    layer_params: list of dicts; hidden layers have keys
        {w, b, gamma, beta, running_mean, running_var}, final layer {w, b}.
        w has PyTorch Conv1d shape (out_c, in_c) (kernel-size-1 squeezed).
    Returns [B, C_out_last, N] f32 (same layout as the PyTorch module).
    """
    if stream_dtype is None:
        stream_dtype = _default_stream_dtype()

    B, Cg, N = grids.shape
    _, Cc, _ = codewords.shape
    num_hidden = len(layer_params) - 1

    # Effective tile along N (lane axis): multiple of 128, capped at ~N.
    n_up_128 = -(-N // 128) * 128
    tile = max(128, min((tile_n // 128) * 128, n_up_128))
    n_pad = -(-N // tile) * tile
    if n_pad != N:                       # only pad when N is not tile-aligned
        pad = n_pad - N
        grids = jnp.pad(grids, ((0, 0), (0, 0), (0, pad)))
        codewords = jnp.pad(codewords, ((0, 0), (0, 0), (0, pad)))

    g_in = grids.astype(stream_dtype)
    c_in = codewords.astype(stream_dtype)

    in_specs = [
        pl.BlockSpec((None, Cg, tile), lambda b, j: (b, 0, j)),
        pl.BlockSpec((None, Cc, tile), lambda b, j: (b, 0, j)),
    ]

    def full_spec(shape):
        return pl.BlockSpec(shape, lambda b, j, _n=len(shape): (0,) * _n)

    kernel_inputs = []

    # First conv: split weight over the two concatenated inputs.
    lp0 = layer_params[0]
    w0 = lp0["w"].astype(stream_dtype)            # (C1, Cg+Cc)
    wg0, wc0 = w0[:, :Cg], w0[:, Cg:]
    kernel_inputs += [wg0, wc0]
    in_specs += [full_spec(wg0.shape), full_spec(wc0.shape)]

    if num_hidden >= 1:
        s0, t0 = _fold_bn(lp0)
        kernel_inputs += [s0, t0]
        in_specs += [full_spec(s0.shape), full_spec(t0.shape)]

        for lp in layer_params[1:-1]:
            w = lp["w"].astype(stream_dtype)
            s, t = _fold_bn(lp)
            kernel_inputs += [w, s, t]
            in_specs += [full_spec(w.shape), full_spec(s.shape), full_spec(t.shape)]

        lp_last = layer_params[-1]
        w_last = lp_last["w"].astype(stream_dtype)
        b_last = lp_last["b"].reshape(-1, 1).astype(jnp.float32)
        kernel_inputs += [w_last, b_last]
        in_specs += [full_spec(w_last.shape), full_spec(b_last.shape)]
        c_out = w_last.shape[0]
    else:
        b0 = lp0["b"].reshape(-1, 1).astype(jnp.float32)
        kernel_inputs += [b0]
        in_specs += [full_spec(b0.shape)]
        c_out = w0.shape[0]

    out = pl.pallas_call(
        _make_folding_kernel(num_hidden),
        out_shape=jax.ShapeDtypeStruct((B, c_out, n_pad), jnp.float32),
        grid_spec=pltpu.PrefetchScalarGridSpec(
            num_scalar_prefetch=0,
            grid=(B, n_pad // tile),
            in_specs=in_specs,
            out_specs=pl.BlockSpec((None, c_out, tile), lambda b, j: (b, 0, j)),
        ),
        compiler_params=pltpu.CompilerParams(
            dimension_semantics=("parallel", "parallel")),
    )(g_in, c_in, *kernel_inputs)

    if n_pad != N:
        out = out[:, :, :N]
    return out


def _reference_forward(grids, codewords, layer_params):
    """Pure-JAX reference mirroring the PyTorch module (BN in eval mode)."""
    x = jnp.concatenate([grids, codewords], axis=1)  # [B, Cin, N]
    for lp in layer_params[:-1]:
        y = jnp.einsum("oc,bcn->bon", lp["w"], x) + lp["b"][None, :, None]
        y = (y - lp["running_mean"][None, :, None]) / jnp.sqrt(
            lp["running_var"][None, :, None] + BN_EPS)
        y = y * lp["gamma"][None, :, None] + lp["beta"][None, :, None]
        x = jnp.maximum(y, 0.0)
    lp = layer_params[-1]
    return jnp.einsum("oc,bcn->bon", lp["w"], x) + lp["b"][None, :, None]


def _init_params(key, in_channel, out_channels):
    """Deterministic parameter init matching the module's __init__ shapes."""
    params = []
    ic = in_channel
    for li, oc in enumerate(out_channels[:-1]):
        k = jax.random.fold_in(key, li)
        kw, kb, kg, kbe, km, kv = jax.random.split(k, 6)
        params.append({
            "w": 0.1 * jax.random.normal(kw, (oc, ic), jnp.float32),
            "b": 0.1 * jax.random.normal(kb, (oc,), jnp.float32),
            "gamma": 1.0 + 0.1 * jax.random.normal(kg, (oc,), jnp.float32),
            "beta": 0.1 * jax.random.normal(kbe, (oc,), jnp.float32),
            "running_mean": 0.05 * jax.random.normal(km, (oc,), jnp.float32),
            "running_var": 1.0 + 0.1 * jax.random.uniform(kv, (oc,), jnp.float32),
        })
        ic = oc
    k = jax.random.fold_in(key, len(out_channels))
    kw, kb = jax.random.split(k)
    params.append({
        "w": 0.1 * jax.random.normal(kw, (out_channels[-1], ic), jnp.float32),
        "b": 0.1 * jax.random.normal(kb, (out_channels[-1],), jnp.float32),
    })
    return params


if __name__ == "__main__":
    key = jax.random.PRNGKey(0)
    kg, kc, kp = jax.random.split(key, 3)

    B, N = 2, 1000                    # N deliberately NOT a multiple of 128
    grid_c, code_c = 2, 30            # concat -> in_channel = 32
    out_channels = [32, 32, 3]        # FoldingNet-style folding MLP (small)

    grids = jax.random.normal(kg, (B, grid_c, N), jnp.float32)
    codewords = jax.random.normal(kc, (B, code_c, N), jnp.float32)
    params = _init_params(kp, grid_c + code_c, out_channels)

    ref = _reference_forward(grids, codewords, params)

    # f32 streaming path (exact-ish; what v5e would run).
    out = folding_layer_forward(grids, codewords, params,
                                tile_n=512, stream_dtype=jnp.float32)
    out = jax.block_until_ready(out)
    assert out.shape == (B, out_channels[-1], N)
    assert jnp.allclose(out, ref, atol=1e-4, rtol=1e-4), "f32 mismatch vs reference"

    # bf16 activation-streaming path (the v6e/v7x fast path); loose sanity check.
    out_bf16 = folding_layer_forward(grids, codewords, params,
                                     tile_n=512, stream_dtype=jnp.bfloat16)
    out_bf16 = jax.block_until_ready(out_bf16)
    assert out_bf16.shape == (B, out_channels[-1], N)
    assert jnp.allclose(out_bf16, ref, atol=1e-1, rtol=1e-1), "bf16 path diverged"

    print("KERNEL_OK")
</pallas_src>

<mosaic_0001>
module attributes {stable_mosaic.version = 11 : i64} {
  func.func @kernel(%arg0: i32, %arg1: i32, %arg2: memref<1x2x512xf32, #tpu.memory_space<vmem>>, %arg3: memref<1x30x512xf32, #tpu.memory_space<vmem>>, %arg4: memref<32x2xf32, #tpu.memory_space<vmem>>, %arg5: memref<32x30xf32, #tpu.memory_space<vmem>>, %arg6: memref<32x1xf32, #tpu.memory_space<vmem>>, %arg7: memref<32x1xf32, #tpu.memory_space<vmem>>, %arg8: memref<32x32xf32, #tpu.memory_space<vmem>>, %arg9: memref<32x1xf32, #tpu.memory_space<vmem>>, %arg10: memref<32x1xf32, #tpu.memory_space<vmem>>, %arg11: memref<3x32xf32, #tpu.memory_space<vmem>>, %arg12: memref<3x1xf32, #tpu.memory_space<vmem>>, %arg13: memref<1x3x512xf32, #tpu.memory_space<vmem>>) attributes {dimension_semantics = [#tpu.dimension_semantics<parallel>, #tpu.dimension_semantics<parallel>], iteration_bounds = array<i64: 2, 2>, scalar_prefetch = 0 : i64, scratch_operands = 0 : i64, tpu.core_type = #tpu.core_type<tc>, window_params = [{transform_indices = @transform_0, window_bounds = array<i64: 1, 2, 512>}, {transform_indices = @transform_1, window_bounds = array<i64: 1, 30, 512>}, {pipeline_mode = #tpu.pipeline_mode<synchronous>, transform_indices = @transform_2, window_bounds = array<i64: 32, 2>}, {pipeline_mode = #tpu.pipeline_mode<synchronous>, transform_indices = @transform_3, window_bounds = array<i64: 32, 30>}, {pipeline_mode = #tpu.pipeline_mode<synchronous>, transform_indices = @transform_4, window_bounds = array<i64: 32, 1>}, {pipeline_mode = #tpu.pipeline_mode<synchronous>, transform_indices = @transform_5, window_bounds = array<i64: 32, 1>}, {pipeline_mode = #tpu.pipeline_mode<synchronous>, transform_indices = @transform_6, window_bounds = array<i64: 32, 32>}, {pipeline_mode = #tpu.pipeline_mode<synchronous>, transform_indices = @transform_7, window_bounds = array<i64: 32, 1>}, {pipeline_mode = #tpu.pipeline_mode<synchronous>, transform_indices = @transform_8, window_bounds = array<i64: 32, 1>}, {pipeline_mode = #tpu.pipeline_mode<synchronous>, transform_indices = @transform_9, window_bounds = array<i64: 3, 32>}, {pipeline_mode = #tpu.pipeline_mode<synchronous>, transform_indices = @transform_10, window_bounds = array<i64: 3, 1>}, {transform_indices = @transform_11, window_bounds = array<i64: 1, 3, 512>}]} {
    %c0 = arith.constant 0 : index
    %c0_0 = arith.constant 0 : index
    %0 = vector.load %arg4[%c0, %c0_0] : memref<32x2xf32, #tpu.memory_space<vmem>>, vector<32x2xf32>
    %c0_1 = arith.constant 0 : index
    %c0_2 = arith.constant 0 : index
    %1 = vector.load %arg5[%c0_1, %c0_2] : memref<32x30xf32, #tpu.memory_space<vmem>>, vector<32x30xf32>
    %c0_3 = arith.constant 0 : index
    %c0_4 = arith.constant 0 : index
    %c0_5 = arith.constant 0 : index
    %2 = vector.load %arg2[%c0_3, %c0_4, %c0_5] : memref<1x2x512xf32, #tpu.memory_space<vmem>>, vector<1x2x512xf32>
    %3 = vector.shape_cast %2 : vector<1x2x512xf32> to vector<2x512xf32>
    %cst = arith.constant dense<0.000000e+00> : vector<32x512xf32>
    %4 = tpu.matmul %0, %3, %cst {dimension_numbers = #tpu.dot_dimension_numbers<[1], [0], [0], [1], [0, 0, 1, 1], [], []>} : vector<32x2xf32>, vector<2x512xf32>, vector<32x512xf32> -> vector<32x512xf32>
    %c0_6 = arith.constant 0 : index
    %c0_7 = arith.constant 0 : index
    %c0_8 = arith.constant 0 : index
    %5 = vector.load %arg3[%c0_6, %c0_7, %c0_8] : memref<1x30x512xf32, #tpu.memory_space<vmem>>, vector<1x30x512xf32>
    %6 = vector.shape_cast %5 : vector<1x30x512xf32> to vector<30x512xf32>
    %cst_9 = arith.constant dense<0.000000e+00> : vector<32x512xf32>
    %7 = tpu.matmul %1, %6, %cst_9 {dimension_numbers = #tpu.dot_dimension_numbers<[1], [0], [0], [1], [0, 0, 1, 1], [], []>} : vector<32x30xf32>, vector<30x512xf32>, vector<32x512xf32> -> vector<32x512xf32>
    %8 = arith.addf %4, %7 : vector<32x512xf32>
    %c0_10 = arith.constant 0 : index
    %c0_11 = arith.constant 0 : index
    %9 = vector.load %arg6[%c0_10, %c0_11] : memref<32x1xf32, #tpu.memory_space<vmem>>, vector<32x1xf32>
    %c0_12 = arith.constant 0 : index
    %c0_13 = arith.constant 0 : index
    %10 = vector.load %arg7[%c0_12, %c0_13] : memref<32x1xf32, #tpu.memory_space<vmem>>, vector<32x1xf32>
    %11 = vector.broadcast %9 : vector<32x1xf32> to vector<32x512xf32>
    %12 = arith.mulf %8, %11 : vector<32x512xf32>
    %13 = vector.broadcast %10 : vector<32x1xf32> to vector<32x512xf32>
    %14 = arith.addf %12, %13 : vector<32x512xf32>
    %cst_14 = arith.constant 0.000000e+00 : f32
    %15 = vector.broadcast %cst_14 : f32 to vector<32x512xf32>
    %16 = arith.maximumf %14, %15 : vector<32x512xf32>
    %c0_15 = arith.constant 0 : index
    %c0_16 = arith.constant 0 : index
    %17 = vector.load %arg8[%c0_15, %c0_16] : memref<32x32xf32, #tpu.memory_space<vmem>>, vector<32x32xf32>
    %c0_17 = arith.constant 0 : index
    %c0_18 = arith.constant 0 : index
    %18 = vector.load %arg9[%c0_17, %c0_18] : memref<32x1xf32, #tpu.memory_space<vmem>>, vector<32x1xf32>
    %c0_19 = arith.constant 0 : index
    %c0_20 = arith.constant 0 : index
    %19 = vector.load %arg10[%c0_19, %c0_20] : memref<32x1xf32, #tpu.memory_space<vmem>>, vector<32x1xf32>
    %cst_21 = arith.constant dense<0.000000e+00> : vector<32x512xf32>
    %20 = tpu.matmul %17, %16, %cst_21 {dimension_numbers = #tpu.dot_dimension_numbers<[1], [0], [0], [1], [0, 0, 1, 1], [], []>} : vector<32x32xf32>, vector<32x512xf32>, vector<32x512xf32> -> vector<32x512xf32>
    %21 = vector.broadcast %18 : vector<32x1xf32> to vector<32x512xf32>
    %22 = arith.mulf %20, %21 : vector<32x512xf32>
    %23 = vector.broadcast %19 : vector<32x1xf32> to vector<32x512xf32>
    %24 = arith.addf %22, %23 : vector<32x512xf32>
    %cst_22 = arith.constant 0.000000e+00 : f32
    %25 = vector.broadcast %cst_22 : f32 to vector<32x512xf32>
    %26 = arith.maximumf %24, %25 : vector<32x512xf32>
    %c0_23 = arith.constant 0 : index
    %c0_24 = arith.constant 0 : index
    %27 = vector.load %arg11[%c0_23, %c0_24] : memref<3x32xf32, #tpu.memory_space<vmem>>, vector<3x32xf32>
    %c0_25 = arith.constant 0 : index
    %c0_26 = arith.constant 0 : index
    %28 = vector.load %arg12[%c0_25, %c0_26] : memref<3x1xf32, #tpu.memory_space<vmem>>, vector<3x1xf32>
    %cst_27 = arith.constant dense<0.000000e+00> : vector<3x512xf32>
    %29 = tpu.matmul %27, %26, %cst_27 {dimension_numbers = #tpu.dot_dimension_numbers<[1], [0], [0], [1], [0, 0, 1, 1], [], []>} : vector<3x32xf32>, vector<32x512xf32>, vector<3x512xf32> -> vector<3x512xf32>
    %30 = vector.broadcast %28 : vector<3x1xf32> to vector<3x512xf32>
    %31 = arith.addf %29, %30 : vector<3x512xf32>
    %c0_28 = arith.constant 0 : index
    %c0_29 = arith.constant 0 : index
    %c0_30 = arith.constant 0 : index
    %32 = vector.load %arg13[%c0_28, %c0_29, %c0_30] : memref<1x3x512xf32, #tpu.memory_space<vmem>>, vector<1x3x512xf32>
    %33 = vector.shape_cast %32 : vector<1x3x512xf32> to vector<3x512xf32>
    %34 = vector.shape_cast %31 : vector<3x512xf32> to vector<1x3x512xf32>
    tpu.vector_store %arg13[%c0_28, %c0_29, %c0_30], %34 {strides = array<i32>} : memref<1x3x512xf32, #tpu.memory_space<vmem>>, vector<1x3x512xf32>,
    return
  }
  func.func @transform_0(%arg0: i32, %arg1: i32) -> (i32, i32, i32) {
    %c0_i32 = arith.constant 0 : i32
    %c0_i32_0 = arith.constant 0 : i32
    return %arg0, %c0_i32, %arg1 : i32, i32, i32
  }
  func.func @transform_1(%arg0: i32, %arg1: i32) -> (i32, i32, i32) {
    %c0_i32 = arith.constant 0 : i32
    %c0_i32_0 = arith.constant 0 : i32
    return %arg0, %c0_i32, %arg1 : i32, i32, i32
  }
  func.func @transform_2(%arg0: i32, %arg1: i32) -> (i32, i32) {
    %c0_i32 = arith.constant 0 : i32
    %c0_i32_0 = arith.constant 0 : i32
    %c0_i32_1 = arith.constant 0 : i32
    return %c0_i32, %c0_i32_0 : i32, i32
  }
  func.func @transform_3(%arg0: i32, %arg1: i32) -> (i32, i32) {
    %c0_i32 = arith.constant 0 : i32
    %c0_i32_0 = arith.constant 0 : i32
    %c0_i32_1 = arith.constant 0 : i32
    return %c0_i32, %c0_i32_0 : i32, i32
  }
  func.func @transform_4(%arg0: i32, %arg1: i32) -> (i32, i32) {
    %c0_i32 = arith.constant 0 : i32
    %c0_i32_0 = arith.constant 0 : i32
    %c0_i32_1 = arith.constant 0 : i32
    return %c0_i32, %c0_i32_0 : i32, i32
  }
  func.func @transform_5(%arg0: i32, %arg1: i32) -> (i32, i32) {
    %c0_i32 = arith.constant 0 : i32
    %c0_i32_0 = arith.constant 0 : i32
    %c0_i32_1 = arith.constant 0 : i32
    return %c0_i32, %c0_i32_0 : i32, i32
  }
  func.func @transform_6(%arg0: i32, %arg1: i32) -> (i32, i32) {
    %c0_i32 = arith.constant 0 : i32
    %c0_i32_0 = arith.constant 0 : i32
    %c0_i32_1 = arith.constant 0 : i32
    return %c0_i32, %c0_i32_0 : i32, i32
  }
  func.func @transform_7(%arg0: i32, %arg1: i32) -> (i32, i32) {
    %c0_i32 = arith.constant 0 : i32
    %c0_i32_0 = arith.constant 0 : i32
    %c0_i32_1 = arith.constant 0 : i32
    return %c0_i32, %c0_i32_0 : i32, i32
  }
  func.func @transform_8(%arg0: i32, %arg1: i32) -> (i32, i32) {
    %c0_i32 = arith.constant 0 : i32
    %c0_i32_0 = arith.constant 0 : i32
    %c0_i32_1 = arith.constant 0 : i32
    return %c0_i32, %c0_i32_0 : i32, i32
  }
  func.func @transform_9(%arg0: i32, %arg1: i32) -> (i32, i32) {
    %c0_i32 = arith.constant 0 : i32
    %c0_i32_0 = arith.constant 0 : i32
    %c0_i32_1 = arith.constant 0 : i32
    return %c0_i32, %c0_i32_0 : i32, i32
  }
  func.func @transform_10(%arg0: i32, %arg1: i32) -> (i32, i32) {
    %c0_i32 = arith.constant 0 : i32
    %c0_i32_0 = arith.constant 0 : i32
    %c0_i32_1 = arith.constant 0 : i32
    return %c0_i32, %c0_i32_0 : i32, i32
  }
  func.func @transform_11(%arg0: i32, %arg1: i32) -> (i32, i32, i32) {
    %c0_i32 = arith.constant 0 : i32
    %c0_i32_0 = arith.constant 0 : i32
    return %arg0, %c0_i32, %arg1 : i32, i32, i32
  }
}

</mosaic_0001>

<bundles_post_ra>
// kernel: tpu_custom_call.1
= control target key start
LH: loop header
LB: loop body
LE: loop exit
PB: predicated region body
PF: predicated region fallthrough
CT: control target
= control target key end

     0   :  { %s2131_s0 = inlined_call_operand.vmem [shape: f32[2,2,1024], index: 0, kind: input, shape index: {}]   ;;  %s2132_s1 = inlined_call_operand.vmem [shape: f32[2,30,1024], index: 1, kind: input, shape index: {}]   ;;  %s2133_s2 = inlined_call_operand.vmem [shape: f32[32,2], index: 2, kind: input, shape index: {}]   ;;  %s2134_s3 = inlined_call_operand.vmem [shape: f32[32,30], index: 3, kind: input, shape index: {}]   ;;  %s2135_s4 = inlined_call_operand.vmem [shape: f32[32,1], index: 4, kind: input, shape index: {}]   ;;  %s2136_s5 = inlined_call_operand.vmem [shape: f32[32,1], index: 5, kind: input, shape index: {}]   ;;  %s2137_s6 = inlined_call_operand.vmem [shape: f32[32,32], index: 6, kind: input, shape index: {}]   ;;  %s2138_s7 = inlined_call_operand.vmem [shape: f32[32,1], index: 7, kind: input, shape index: {}]   ;;  %s2139_s8 = inlined_call_operand.vmem [shape: f32[32,1], index: 8, kind: input, shape index: {}]   ;;  %s2140_s9 = inlined_call_operand.vmem [shape: f32[3,32], index: 9, kind: input, shape index: {}]   ;;  %s2141_s10 = inlined_call_operand.vmem [shape: f32[3,1], index: 10, kind: input, shape index: {}]   ;;  %s2142_s11 = inlined_call_operand.vmem [shape: f32[2,3,1024], index: 11, kind: output, shape index: {}]  }
   0x1   :  { %2145 = sst [smem:[#allocation5_spill]] %s2142_s11 }
   0x2   :  { %s1841_s17 = smov 0   ;;  %s1843_s18 = smov 0  }
   0x3   :  { %s1845_s19 = smov 0   ;;  %s1847_s20 = smov 0  }
   0x4   :  { %s1849_s21 = smov 0   ;;  %s1851_s22 = smov 0  }
   0x5   :  { %s1853_s23 = smov 0  }
   0x6 LB: > { %s30_s24 = sadd.s32 1, %s1768_s21  ;;  %s33_s25 = sadd.s32 1, %s1772_s22  ;;  %s1776_s23 = sphi %s1853_s23, %s21_s23   ;;  %s1772_s22 = sphi %s1851_s22, %s2156_s22   ;;  %s1768_s21 = sphi %s1849_s21, %s2155_s21   ;;  %s1764_s20 = sphi %s1847_s20, %s2154_s20   ;;  %s1760_s19 = sphi %s1845_s19, %s2153_s19   ;;  %s1756_s18 = sphi %s1843_s18, %s2152_s18   ;;  %s1752_s17 = sphi %s1841_s17, %s2151_s17  }
   0x7   : > { %p31_p0 = scmp.ge.s32.totalorder %s30_s24, 2  ;;  %p77_p1 = scmp.ne.s32.totalorder %s1756_s18, %s1752_s17 }
   0x8   : > { %p78_p2 = scmp.eq.s32.totalorder %s1776_s23, 0  ;;  %s70_s29 = sadd.s32 1, %s1756_s18 }
   0x9   : > { %s2158_s24 = smov (%p31_p0, %s30_s24), 0  ;;  %s2160_s25 = smov (!%p31_p0, %s33_s25), %s1772_s22 }
   0xa   : > { %2146 = sst [smem:[#allocation3_spill]] %s2158_s24  ;;  %p79_p3 = por %p78_p2, %p77_p1 }
   0xb   : > { %p35_p4 = scmp.ge.s32.totalorder %s2160_s25, 2  ;;  %s66_s26 = ssub.s32 %s1768_s21, %s2158_s24 }
   0xc   : > { %p1611_p6 = scmp.ge.s32.totalorder %s1776_s23, 4 }
   0xd   : > { %s2162_s25 = smov (%p35_p4, %s2160_s25), 0 }
   0xe   : > { %2147 = sst [smem:[#allocation4_spill]] %s2162_s25  ;;  %s65_s27 = ssub.s32 %s1772_s22, %s2162_s25 }
   0xf   : > { %s67_s28 = sor.u32 %s66_s26, %s65_s27  ;;  %347 = sbr.rel (%p1611_p6) target bundleno = 35 (0x23), region = 52 }
  0x10   : > { %p68_p5 = scmp.eq.s32.totalorder %s67_s28, 0 }
  0x12   : > { %s1892_s30 = scalar_select %p68_p5, %s1756_s18, %s70_s29  }
  0x14   : > { %363 = sbr.rel (!%p79_p3) target bundleno = 35 (0x23), region = 60  ;;  %s365_s12 = sand.u32 (%p79_p3), 1, %s1756_s18  }
  0x15   : > { %s1613_s13 = sshll.u32 (%p79_p3), %s1768_s21, 2  ;;  %s1612_s14 = sshll.u32 (%p79_p3), %s365_s12, 7 }
  0x16   : > { %s1614_s15 = sshll.u32 (%p79_p3), %s1772_s22, 5  ;;  %s367_s27 = scalar_lea.vmem (%p79_p3), [#allocation2], %s1612_s14 }
  0x17   : > { %s370_s16 = sadd.s32 (%p79_p3), %s1614_s15, %s1613_s13 }
  0x18   : > { %s1615_s24 = sshll.u32 (%p79_p3), %s370_s16, 3 }
  0x19   : > { %s1901_s26 = scalar_lea.vmem %s2132_s1, %s1615_s24 }
  0x1a   : > { %v385_v0 = vld [vmem:[%s1901_s26] sm:$0xff]  ;;  %v387_v1 = vld [vmem:[%s1901_s26 + $0x8] sm:$0xff]  ;;  %v389_v2 = vld [vmem:[%s1901_s26 + $0x10] sm:$0xff] }
  0x1b   : > { %386 = vst [vmem:[%s367_s27] sm:$0xff] %v385_v0  ;;  %388 = vst [vmem:[%s367_s27 + $0x8] sm:$0xff] %v387_v1  ;;  %v391_v3 = vld [vmem:[%s1901_s26 + $0x18] sm:$0xff]  ;;  %v393_v4 = vld [vmem:[%s1901_s26 + $0x40] sm:$0xff] }
  0x1c   : > { %390 = vst [vmem:[%s367_s27 + $0x10] sm:$0xff] %v389_v2  ;;  %v395_v5 = vld [vmem:[%s1901_s26 + $0x48] sm:$0xff]  ;;  %392 = vst [vmem:[%s367_s27 + $0x18] sm:$0xff] %v391_v3  ;;  %v397_v6 = vld [vmem:[%s1901_s26 + $0x50] sm:$0xff] }
  0x1d   : > { %394 = vst [vmem:[%s367_s27 + $0x20] sm:$0xff] %v393_v4  ;;  %396 = vst [vmem:[%s367_s27 + $0x28] sm:$0xff] %v395_v5  ;;  %v399_v7 = vld [vmem:[%s1901_s26 + $0x58] sm:$0xff]  ;;  %v401_v8 = vld [vmem:[%s1901_s26 + $0x80] sm:$0xff] }
  0x1e   : > { %398 = vst [vmem:[%s367_s27 + $0x30] sm:$0xff] %v397_v6  ;;  %400 = vst [vmem:[%s367_s27 + $0x38] sm:$0xff] %v399_v7  ;;  %v403_v9 = vld [vmem:[%s1901_s26 + $0x88] sm:$0xff]  ;;  %v405_v10 = vld [vmem:[%s1901_s26 + $0x90] sm:$0xff] }
  0x1f   : > { %402 = vst [vmem:[%s367_s27 + $0x40] sm:$0xff] %v401_v8  ;;  %v407_v11 = vld [vmem:[%s1901_s26 + $0x98] sm:$0xff]  ;;  %404 = vst [vmem:[%s367_s27 + $0x48] sm:$0xff] %v403_v9  ;;  %v409_v12 = vld [vmem:[%s1901_s26 + $0xc0] sm:$0xff] }
  0x20   : > { %406 = vst [vmem:[%s367_s27 + $0x50] sm:$0xff] %v405_v10  ;;  %408 = vst [vmem:[%s367_s27 + $0x58] sm:$0xff] %v407_v11  ;;  %v411_v13 = vld [vmem:[%s1901_s26 + $0xc8] sm:$0xff]  ;;  %v413_v14 = vld [vmem:[%s1901_s26 + $0xd0] sm:$0xff] }
  0x21   : > { %410 = vst [vmem:[%s367_s27 + $0x60] sm:$0xff] %v409_v12  ;;  %412 = vst [vmem:[%s367_s27 + $0x68] sm:$0xff] %v411_v13  ;;  %v415_v15 = vld [vmem:[%s1901_s26 + $0xd8] sm:$0xff] }
  0x22   : > { %414 = vst [vmem:[%s367_s27 + $0x70] sm:$0xff] %v413_v14  ;;  %416 = vst [vmem:[%s367_s27 + $0x78] sm:$0xff] %v415_v15 }
  0x23 PF: > { %p1616_p7 = scmp.ge.s32.totalorder %s1776_s23, 1  ;;  %p421_p8 = scmp.lt.s32.totalorder %s1776_s23, 5 }
  0x25   : > { %p422_p9 = pnand %p1616_p7, %p421_p8 }
  0x26   : > { %s428_s11 = sand.u32 (!%p422_p9), 1, %s1752_s17   ;;  %s1618_s25 = sshll.u32 (!%p422_p9), %s1760_s19, 2 }
  0x27   : > { %425 = sbr.rel (%p422_p9) target bundleno = 714 (0x2ca), region = 83  ;;  %s1617_s24 = sshll.u32 (!%p422_p9), %s428_s11, 7 }
  0x28   : > { %p481_p10 = scmp.lt.s32.totalorder (!%p422_p9), %s1764_s20, 1  ;;  %s1926_s28 = scalar_lea.vmem (!%p422_p9), [#allocation2], %s1617_s24 }
  0x29   : > { %p483_p11 = scmp.lt.s32.totalorder (!%p422_p9), %s1618_s25, 7 }
  0x2c   : > { %vm539_vm0 = vcmask 1045504   ;;  %v1778_v16 = vmov 0.0   ;;  %v735_v17 = vlaneseq  ;;  %v1779_v18 = vmov 1983009808   ;;  %v523_v20 = vld [vmem:[%s1926_s28 + $0x68] sm:$0x3f] }
  0x2d   : > { %616 = vmatprep.mubr.f32.mxu0 %v1778_v16  ;;  %705 = vmatprep.mubr.f32.mxu1 %v1778_v16  ;;  %v733_v19 = vunpack.c.l.s4 %v1779_v18  ;;  %v525_v21 = vld [vmem:[%s1926_s28 + $0x78] sm:$0x3f]  ;;  %v522_v22 = vld [vmem:[%s1926_s28 + $0x60] sm:$0x3f]  ;;  %v524_v23 = vld [vmem:[%s1926_s28 + $0x70] sm:$0x3f] }
  0x2e   : > { %1624 = vmatprep.subr.msk.mxu0 %vm539_vm0, %v523_v20  ;;  %1630 = vmatprep.subr.msk.mxu1 %vm539_vm0, %v525_v21  ;;  %v519_v24 = vld [vmem:[%s1926_s28 + $0x48] sm:$0xff]  ;;  %v521_v25 = vld [vmem:[%s1926_s28 + $0x58] sm:$0xff]  ;;  %s2164_s20 = smov (!%p481_p10, %s1764_s20), 1  ;;  %v518_v26 = vld [vmem:[%s1926_s28 + $0x40] sm:$0xff]  ;;  %v736_v30 = vshrl.u32 %v735_v17, 7  ;;  %s2166_s25 = smov (!%p483_p11, %s1618_s25), 7 }
  0x2f   : > { %1625 = vmatpush1.msk.msra.mxu0 %vm539_vm0, %v522_v22  ;;  %1631 = vmatpush1.msk.msra.mxu1 %vm539_vm0, %v524_v23  ;;  %v520_v27 = vld [vmem:[%s1926_s28 + $0x50] sm:$0xff]  ;;  %v515_v28 = vld [vmem:[%s1926_s28 + $0x28] sm:$0xff]  ;;  %v734_v29 = vunpack.c.0.s8 %v733_v19  ;;  %v517_v31 = vld [vmem:[%s1926_s28 + $0x38] sm:$0xff]  ;;  %s1619_s17 = sshll.u32 %s2164_s20, 3  ;;  %vm526_vm1 = vcmask 244736   ;;  %v1780_v46 = vmov 0  }
  0x30   : > { %578 = vmatprep.subr.mxu0 %v519_v24  ;;  %667 = vmatprep.subr.mxu1 %v521_v25  ;;  %v514_v32 = vld [vmem:[%s1926_s28 + $0x20] sm:$0xff]  ;;  %v516_v33 = vld [vmem:[%s1926_s28 + $0x30] sm:$0xff]  ;;  %v511_v34 = vld [vmem:[%s1926_s28 + $0x8] sm:$0xff]  ;;  %s1959_s13 = sadd.s32 %s1619_s17, %s2166_s25  ;;  %vm761_vm2 = vcmask 1041408   ;;  %vm748_vm3 = vcmask 15360   ;;  %vm1056_vm4 = vcmask 261120  }
  0x31   : > { %579 = vmatpush1.msra.mxu0 %v518_v26  ;;  %668 = vmatpush1.msra.mxu1 %v520_v27  ;;  %v513_v35 = vld [vmem:[%s1926_s28 + $0x18] sm:$0xff]  ;;  %v510_v36 = vld [vmem:[%s1926_s28] sm:$0xff]  ;;  %v512_v37 = vld [vmem:[%s1926_s28 + $0x10] sm:$0xff]  ;;  %v737_v39 = vsub.s32 %v734_v29, %v736_v30  ;;  %s1620_s20 = sshll.u32 %s1959_s13, 1  ;;  %s1623_s27 = sshll.u32 %s1959_s13, 2 }
  0x32   : > { %580 = vmatprep.subr.mxu0 %v515_v28  ;;  %669 = vmatprep.subr.mxu1 %v517_v31  ;;  %v505_v38 = vld [vmem:[%s2134_s3] sm:$0xff]  ;;  %s488_s15 = scalar_lea.vmem %s2131_s0, %s1620_s20  ;;  %v951_v41 = vld [vmem:[%s2135_s4 + $0x18] sm:$0xff]  ;;  %v506_v43 = vld [vmem:[%s2134_s3 + $0x8] sm:$0xff]  ;;  %s2148_s25 = sld [smem:[#allocation5_spill]] }
  0x33   : > { %581 = vmatpush1.msra.mxu0 %v514_v32  ;;  %670 = vmatpush1.msra.mxu1 %v516_v33  ;;  %v509_v40 = vld [vmem:[%s488_s15] sm:$0xff]  ;;  %v955_v42 = vld [vmem:[%s2136_s5 + $0x18] sm:$0xff]  ;;  %v507_v49 = vld [vmem:[%s2134_s3 + $0x10] sm:$0xff] }
  0x34   : > { %582 = vmatprep.subr.mxu0 %v511_v34  ;;  %671 = vmatprep.subr.mxu1 %v513_v35  ;;  %v738_v44 = vrot.slane %v509_v40, %v737_v39  ;;  %v731_v45 = vcombine.high %v509_v40, %v509_v40  ;;  %v950_v51 = vld [vmem:[%s2135_s4 + $0x10] sm:$0xff]  ;;  %v949_v52 = vld [vmem:[%s2135_s4 + $0x8] sm:$0xff]  ;;  %v508_v53 = vld [vmem:[%s2134_s3 + $0x18] sm:$0xff] }
  0x35   : > { %583 = vmatpush1.msra.mxu0 %v510_v36  ;;  %672 = vmatpush1.msra.mxu1 %v512_v37  ;;  %v954_v54 = vld [vmem:[%s2136_s5 + $0x10] sm:$0xff]  ;;  %v948_v55 = vld [vmem:[%s2135_s4] sm:$0xff]  ;;  %v953_v57 = vld [vmem:[%s2136_s5 + $0x8] sm:$0xff] }
  0x36   : > { %1626 = vmatmul.mubr.msk.f32.vlgmr.msra.gmra.mxu0 %vm526_vm1, %v505_v38  ;;  %1632 = vmatmul.mubr.msk.f32.vlgmr.msra.gmra.mxu1 %vm526_vm1, %v505_v38  ;;  %v746_v47 = vcombine.high %v738_v44, %v738_v44  ;;  %v745_v48 = vrot.slane %v731_v45, %v737_v39  ;;  %v501_v56 = vld [vmem:[%s2133_s2] sm:$0xff]  ;;  %v502_v59 = vld [vmem:[%s2133_s2 + $0x8] sm:$0xff]  ;;  %v1051_v60 = vld [vmem:[%s2138_s7 + $0x18] sm:$0xff] }
  0x37   : > { %622 = vmatprep.mubr.f32.mxu0 %v1778_v16  ;;  %711 = vmatprep.mubr.f32.mxu1 %v1778_v16  ;;  %v952_v58 = vld [vmem:[%s2136_s5] sm:$0xff]  ;;  %v1050_v61 = vld [vmem:[%s2138_s7 + $0x10] sm:$0xff]  ;;  %v1055_v63 = vld [vmem:[%s2139_s8 + $0x18] sm:$0xff] }
  0x38   : > { %1719 = vset.pattern.permute.xlu0 %v1780_v46  ;;  %1720 = vset.pattern.permute.xlu1 %v1780_v46  ;;  %v747_v50 = vcombine.high %v745_v48, %v745_v48  ;;  %v503_v62 = vld [vmem:[%s2133_s2 + $0x10] sm:$0xff]  ;;  %v1049_v0 = vld [vmem:[%s2138_s7 + $0x8] sm:$0xff]  ;;  %v504_v1 = vld [vmem:[%s2133_s2 + $0x18] sm:$0xff]  ;;  %s499_s28 = scalar_lea.vmem %s2148_s25, %s1623_s27 }
  0x39   : > { %973 = vperm.xlu0 %1719, %v951_v41   ;;  %1009 = vperm.xlu1 %1720, %v955_v42   ;;  %v1054_v2 = vld [vmem:[%s2139_s8 + $0x10] sm:$0xff]  ;;  %v1048_v3 = vld [vmem:[%s2138_s7] sm:$0xff]  ;;  %v1053_v4 = vld [vmem:[%s2139_s8 + $0x8] sm:$0xff] }
  0x3a   : > { %1627 = vmatmul.mubr.msk.f32.gmra.mxu0 %vm526_vm1, %v506_v43  ;;  %1633 = vmatmul.mubr.msk.f32.gmra.mxu1 %vm526_vm1, %v506_v43  ;;  %v1052_v5 = vld [vmem:[%s2139_s8] sm:$0xff] }
  0x3b   : > { %628 = vmatprep.mubr.f32.mxu0 %v1778_v16  ;;  %717 = vmatprep.mubr.f32.mxu1 %v1778_v16  ;;  %v1336_v6 = vld [vmem:[%s2141_s10] sm:$0x7] }
  0x3c   : > { %1636 = vmatprep.subr.msk.mxu0 %vm761_vm2, %v746_v47  ;;  %1642 = vmatprep.subr.msk.mxu1 %vm761_vm2, %v747_v50 }
  0x3d   : > { %1637 = vmatpush1.msk.msra.mxu0 %vm761_vm2, %v738_v44  ;;  %1643 = vmatpush1.msk.msra.mxu1 %vm761_vm2, %v745_v48 }
  0x3e   : > { %1628 = vmatmul.mubr.msk.f32.gmra.mxu0 %vm526_vm1, %v507_v49  ;;  %1634 = vmatmul.mubr.msk.f32.gmra.mxu1 %vm526_vm1, %v507_v49 }
  0x3f   : > { %634 = vmatprep.mubr.f32.mxu0 %v1778_v16  ;;  %723 = vmatprep.mubr.f32.mxu1 %v1778_v16 }
  0x40   : > { %968 = vperm.xlu0 %1719, %v950_v51   ;;  %963 = vperm.xlu1 %1720, %v949_v52  }
  0x42   : > { %1629 = vmatmul.mubr.msk.f32.gmra.mxu0 %vm526_vm1, %v508_v53  ;;  %1635 = vmatmul.mubr.msk.f32.gmra.mxu1 %vm526_vm1, %v508_v53 }
  0x43   : > { %834 = vmatprep.mubr.f32.mxu0 %v1778_v16  ;;  %923 = vmatprep.mubr.f32.mxu1 %v1778_v16 }
  0x44   : > { %1004 = vperm.xlu0 %1719, %v954_v54   ;;  %958 = vperm.xlu1 %1720, %v948_v55  }
  0x46   : > { %1638 = vmatmul.mubr.msk.f32.vlgmr.msra.gmra.mxu0 %vm748_vm3, %v501_v56  ;;  %1644 = vmatmul.mubr.msk.f32.vlgmr.msra.gmra.mxu1 %vm748_vm3, %v501_v56 }
  0x47   : > { %840 = vmatprep.mubr.f32.mxu0 %v1778_v16  ;;  %929 = vmatprep.mubr.f32.mxu1 %v1778_v16 }
  0x48   : > { %999 = vperm.xlu0 %1719, %v953_v57   ;;  %994 = vperm.xlu1 %1720, %v952_v58  }
  0x4a   : > { %1639 = vmatmul.mubr.msk.f32.gmra.mxu0 %vm748_vm3, %v502_v59  ;;  %1645 = vmatmul.mubr.msk.f32.gmra.mxu1 %vm748_vm3, %v502_v59 }
  0x4b   : > { %846 = vmatprep.mubr.f32.mxu0 %v1778_v16  ;;  %935 = vmatprep.mubr.f32.mxu1 %v1778_v16 }
  0x4c   : > { %1264 = vperm.xlu0 %1719, %v1051_v60   ;;  %1259 = vperm.xlu1 %1720, %v1050_v61  }
  0x4e   : > { %1640 = vmatmul.mubr.msk.f32.gmra.mxu0 %vm748_vm3, %v503_v62  ;;  %1646 = vmatmul.mubr.msk.f32.gmra.mxu1 %vm748_vm3, %v503_v62 }
  0x4f   : > { %852 = vmatprep.mubr.f32.mxu0 %v1778_v16  ;;  %941 = vmatprep.mubr.f32.mxu1 %v1778_v16 }
  0x50   : > { %1300 = vperm.xlu0 %1719, %v1055_v63   ;;  %1254 = vperm.xlu1 %1720, %v1049_v0  }
  0x52   : > { %1641 = vmatmul.mubr.msk.f32.gmra.mxu0 %vm748_vm3, %v504_v1  ;;  %1647 = vmatmul.mubr.msk.f32.gmra.mxu1 %vm748_vm3, %v504_v1 }
  0x53   : > { %1133 = vmatprep.mubr.f32.mxu0 %v1778_v16  ;;  %1222 = vmatprep.mubr.f32.mxu1 %v1778_v16 }
  0x54   : > { %1295 = vperm.xlu0 %1719, %v1054_v2   ;;  %1249 = vperm.xlu1 %1720, %v1048_v3  }
  0x58   : > { %1290 = vperm.xlu0 %1719, %v1053_v4   ;;  %1285 = vperm.xlu1 %1720, %v1052_v5  }
  0x5c   : > { %1339 = vperm.xlu0 %1719, %v1336_v6  }
  0xb4   : > { %v1010_v24 = vpop.permute.xlu1 %1009  ;;  %v974_v27 = vpop.permute.xlu0 %973 }
  0xbb   : > { %v964_v32 = vpop.permute.xlu1 %963  ;;  %v969_v35 = vpop.permute.xlu0 %968 }
  0xbf   : > { %v959_v42 = vpop.permute.xlu1 %958  ;;  %v1005_v51 = vpop.permute.xlu0 %1004 }
  0xf6   : > { %v618_v7 = vpop.f32.mrf.mxu0  ;;  %v707_v8 = vpop.f32.mrf.mxu1 }
  0xf8   : > { %v620_v9 = vpop.f32.mrf.mxu0  ;;  %v709_v10 = vpop.f32.mrf.mxu1 }
  0xfa   : > { %v624_v11 = vpop.f32.mrf.mxu0  ;;  %v713_v12 = vpop.f32.mrf.mxu1 }
  0xfc   : > { %v626_v13 = vpop.f32.mrf.mxu0  ;;  %v715_v14 = vpop.f32.mrf.mxu1 }
  0xfe   : > { %v630_v15 = vpop.f32.mrf.mxu0  ;;  %v719_v17 = vpop.f32.mrf.mxu1 }
 0x100   : > { %v632_v18 = vpop.f32.mrf.mxu0  ;;  %v721_v19 = vpop.f32.mrf.mxu1 }
 0x102   : > { %v636_v20 = vpop.f32.mrf.mxu0  ;;  %v725_v21 = vpop.f32.mrf.mxu1 }
 0x104   : > { %v638_v22 = vpop.f32.mrf.mxu0  ;;  %v727_v23 = vpop.f32.mrf.mxu1 }
 0x106   : > { %v836_v25 = vpop.f32.mrf.mxu0  ;;  %v925_v26 = vpop.f32.mrf.mxu1 }
 0x107   : > { %v837_v45 = vadd.f32 %v836_v25, %v618_v7  ;;  %v926_v46 = vadd.f32 %v925_v26, %v707_v8 }
 0x108   : > { %v838_v28 = vpop.f32.mrf.mxu0  ;;  %v927_v29 = vpop.f32.mrf.mxu1 }
 0x109   : > { %v839_v38 = vadd.f32 %v838_v28, %v620_v9  ;;  %v928_v39 = vadd.f32 %v927_v29, %v709_v10 }
 0x10a   : > { %v842_v30 = vpop.f32.mrf.mxu0  ;;  %v931_v31 = vpop.f32.mrf.mxu1 }
 0x10b   : > { %v977_v52 = vmul.f32 %v959_v42, %v839_v38  ;;  %v979_v53 = vmul.f32 %v959_v42, %v928_v39  ;;  %v843_v56 = vadd.f32 %v842_v30, %v624_v11  ;;  %v932_v57 = vadd.f32 %v931_v31, %v713_v12  ;;  %v995_v30 = vpop.permute.xlu1 %994 }
 0x10c   : > { %v844_v33 = vpop.f32.mrf.mxu0  ;;  %v933_v34 = vpop.f32.mrf.mxu1 }
 0x10d   : > { %v845_v54 = vadd.f32 %v844_v33, %v626_v13  ;;  %v934_v55 = vadd.f32 %v933_v34, %v715_v14  ;;  %v980_v10 = vmul.f32 %v964_v32, %v843_v56  ;;  %v982_v13 = vmul.f32 %v964_v32, %v932_v57 }
 0x10e   : > { %v848_v36 = vpop.f32.mrf.mxu0  ;;  %v937_v37 = vpop.f32.mrf.mxu1 }
 0x10f   : > { %v849_v47 = vadd.f32 %v848_v36, %v630_v15  ;;  %v938_v48 = vadd.f32 %v937_v37, %v719_v17  ;;  %v981_v6 = vmul.f32 %v964_v32, %v845_v54  ;;  %v983_v7 = vmul.f32 %v964_v32, %v934_v55  ;;  %v1260_v56 = vpop.permute.xlu1 %1259 }
 0x110   : > { %v850_v40 = vpop.f32.mrf.mxu0  ;;  %v939_v41 = vpop.f32.mrf.mxu1  ;;  %v1015_v36 = vadd.f32 %v995_v30, %v979_v53 }
 0x111   : > { %v851_v43 = vadd.f32 %v850_v40, %v632_v18  ;;  %v940_v44 = vadd.f32 %v939_v41, %v721_v19  ;;  %v984_v2 = vmul.f32 %v969_v35, %v849_v47  ;;  %v986_v3 = vmul.f32 %v969_v35, %v938_v48  ;;  %v1000_v19 = vpop.permute.xlu0 %999 }
 0x112   : > { %v854_v49 = vpop.f32.mrf.mxu0  ;;  %v943_v50 = vpop.f32.mrf.mxu1  ;;  %v1017_v28 = vadd.f32 %v1000_v19, %v981_v6  ;;  %v1019_v29 = vadd.f32 %v1000_v19, %v983_v7  ;;  %v1016_v31 = vadd.f32 %v1000_v19, %v980_v10 }
 0x113   : > { %v855_v58 = vadd.f32 %v854_v49, %v636_v20  ;;  %v944_v59 = vadd.f32 %v943_v50, %v725_v21  ;;  %v985_v62 = vmul.f32 %v969_v35, %v851_v43  ;;  %v987_v63 = vmul.f32 %v969_v35, %v940_v44  ;;  %v1044_v49 = vld [vmem:[%s2137_s6] sm:$0xff]  ;;  %v1045_v50 = vld [vmem:[%s2137_s6 + $0x8] sm:$0xff] }
 0x114   : > { %v856_v60 = vpop.f32.mrf.mxu0  ;;  %v945_v61 = vpop.f32.mrf.mxu1  ;;  %v976_v20 = vmul.f32 %v959_v42, %v837_v45  ;;  %v978_v21 = vmul.f32 %v959_v42, %v926_v46  ;;  %v1013_v35 = vadd.f32 %v995_v30, %v977_v52  ;;  %v1033_v41 = vmax.f32 %v1017_v28, 0.0  ;;  %v1047_v52 = vld [vmem:[%s2137_s6 + $0x18] sm:$0xff] }
 0x115   : > { %v857_v0 = vadd.f32 %v856_v60, %v638_v22  ;;  %v946_v1 = vadd.f32 %v945_v61, %v727_v23  ;;  %v988_v4 = vmul.f32 %v974_v27, %v855_v58  ;;  %v990_v5 = vmul.f32 %v974_v27, %v944_v59  ;;  %v1265_v53 = vpop.permute.xlu0 %1264 }
 0x116   : > { %v1021_v17 = vadd.f32 %v1005_v51, %v985_v62  ;;  %v1023_v18 = vadd.f32 %v1005_v51, %v987_v63  ;;  %v1020_v22 = vadd.f32 %v1005_v51, %v984_v2  ;;  %v1022_v23 = vadd.f32 %v1005_v51, %v986_v3  ;;  %v1046_v51 = vld [vmem:[%s2137_s6 + $0x10] sm:$0xff] }
 0x117   : > { %v989_v8 = vmul.f32 %v974_v27, %v857_v0  ;;  %v991_v9 = vmul.f32 %v974_v27, %v946_v1  ;;  %v1024_v11 = vadd.f32 %v1010_v24, %v988_v4  ;;  %v1026_v12 = vadd.f32 %v1010_v24, %v990_v5  ;;  %v1255_v0 = vpop.permute.xlu1 %1254 }
 0x118   : > { %v1018_v27 = vadd.f32 %v1000_v19, %v982_v13  ;;  %v1037_v34 = vmax.f32 %v1021_v17, 0.0  ;;  %v1012_v37 = vadd.f32 %v995_v30, %v976_v20  ;;  %v1014_v38 = vadd.f32 %v995_v30, %v978_v21 }
 0x119   : > { %v1025_v14 = vadd.f32 %v1010_v24, %v989_v8  ;;  %v1027_v15 = vadd.f32 %v1010_v24, %v991_v9  ;;  %v1040_v33 = vmax.f32 %v1024_v11, 0.0  ;;  %v1042_v32 = vmax.f32 %v1026_v12, 0.0  ;;  %v1301_v61 = vpop.permute.xlu0 %1300 }
 0x11a   : > { %v1039_v24 = vmax.f32 %v1023_v18, 0.0  ;;  %v1036_v39 = vmax.f32 %v1020_v22, 0.0  ;;  %v1038_v40 = vmax.f32 %v1022_v23, 0.0  ;;  %v1035_v42 = vmax.f32 %v1019_v29, 0.0 }
 0x11b   : > { %v1041_v25 = vmax.f32 %v1025_v14, 0.0  ;;  %v1043_v26 = vmax.f32 %v1027_v15, 0.0  ;;  %v1032_v43 = vmax.f32 %v1016_v31, 0.0  ;;  %v1034_v44 = vmax.f32 %v1018_v27, 0.0 }
 0x11c   : > { %v1029_v45 = vmax.f32 %v1013_v35, 0.0  ;;  %v1031_v46 = vmax.f32 %v1015_v36, 0.0  ;;  %v1028_v47 = vmax.f32 %v1012_v37, 0.0  ;;  %v1030_v48 = vmax.f32 %v1014_v38, 0.0 }
 0x11d   : > { %1093 = vmatprep.subr.mxu0 %v1041_v25  ;;  %1182 = vmatprep.subr.mxu1 %v1043_v26  ;;  %v1296_v5 = vpop.permute.xlu0 %1295 }
 0x11e   : > { %1094 = vmatpush1.msra.mxu0 %v1040_v33  ;;  %1183 = vmatpush1.msra.mxu1 %v1042_v32 }
 0x11f   : > { %1095 = vmatprep.subr.mxu0 %v1037_v34  ;;  %1184 = vmatprep.subr.mxu1 %v1039_v24 }
 0x120   : > { %1096 = vmatpush1.msra.mxu0 %v1036_v39  ;;  %1185 = vmatpush1.msra.mxu1 %v1038_v40 }
 0x121   : > { %1097 = vmatprep.subr.mxu0 %v1033_v41  ;;  %1186 = vmatprep.subr.mxu1 %v1035_v42  ;;  %v1291_v33 = vpop.permute.xlu0 %1290 }
 0x122   : > { %1098 = vmatpush1.msra.mxu0 %v1032_v43  ;;  %1187 = vmatpush1.msra.mxu1 %v1034_v44 }
 0x123   : > { %1099 = vmatprep.subr.mxu0 %v1029_v45  ;;  %1188 = vmatprep.subr.mxu1 %v1031_v46 }
 0x124   : > { %1100 = vmatpush1.msra.mxu0 %v1028_v47  ;;  %1189 = vmatpush1.msra.mxu1 %v1030_v48 }
 0x125   : > { %1648 = vmatmul.mubr.msk.f32.vlgmr.msra.gmra.mxu0 %vm1056_vm4, %v1044_v49  ;;  %1652 = vmatmul.mubr.msk.f32.vlgmr.msra.gmra.mxu1 %vm1056_vm4, %v1044_v49 }
 0x126   : > { %1139 = vmatprep.mubr.f32.mxu0 %v1778_v16  ;;  %1228 = vmatprep.mubr.f32.mxu1 %v1778_v16 }
 0x129   : > { %1649 = vmatmul.mubr.msk.f32.gmra.mxu0 %vm1056_vm4, %v1045_v50  ;;  %1653 = vmatmul.mubr.msk.f32.gmra.mxu1 %vm1056_vm4, %v1045_v50 }
 0x12a   : > { %1145 = vmatprep.mubr.f32.mxu0 %v1778_v16  ;;  %1234 = vmatprep.mubr.f32.mxu1 %v1778_v16 }
 0x12d   : > { %1650 = vmatmul.mubr.msk.f32.gmra.mxu0 %vm1056_vm4, %v1046_v51  ;;  %1654 = vmatmul.mubr.msk.f32.gmra.mxu1 %vm1056_vm4, %v1046_v51 }
 0x12e   : > { %1151 = vmatprep.mubr.f32.mxu0 %v1778_v16  ;;  %1240 = vmatprep.mubr.f32.mxu1 %v1778_v16 }
 0x131   : > { %1651 = vmatmul.mubr.msk.f32.gmra.mxu0 %vm1056_vm4, %v1047_v52  ;;  %1655 = vmatmul.mubr.msk.f32.gmra.mxu1 %vm1056_vm4, %v1047_v52 }
 0x132   : > { %1409 = vmatprep.mubr.f32.mxu0 %v1778_v16  ;;  %1480 = vmatprep.mubr.f32.mxu1 %v1778_v16  ;;  %v1250_v16 = vpop.permute.xlu1 %1249 }
 0x136   : > { %v1286_v40 = vpop.permute.xlu1 %1285 }
 0x1e5   : > { %v1135_v54 = vpop.f32.mrf.mxu0  ;;  %v1224_v55 = vpop.f32.mrf.mxu1 }
 0x1e6   : > { %v1267_v32 = vmul.f32 %v1250_v16, %v1135_v54  ;;  %v1269_v34 = vmul.f32 %v1250_v16, %v1224_v55 }
 0x1e7   : > { %v1137_v57 = vpop.f32.mrf.mxu0  ;;  %v1226_v58 = vpop.f32.mrf.mxu1 }
 0x1e8   : > { %v1268_v11 = vmul.f32 %v1250_v16, %v1137_v57  ;;  %v1270_v12 = vmul.f32 %v1250_v16, %v1226_v58  ;;  %v1303_v49 = vadd.f32 %v1286_v40, %v1267_v32  ;;  %v1305_v50 = vadd.f32 %v1286_v40, %v1269_v34 }
 0x1e9   : > { %v1141_v59 = vpop.f32.mrf.mxu0  ;;  %v1230_v60 = vpop.f32.mrf.mxu1 }
 0x1ea   : > { %v1271_v23 = vmul.f32 %v1255_v0, %v1141_v59  ;;  %v1273_v25 = vmul.f32 %v1255_v0, %v1230_v60  ;;  %v1304_v45 = vadd.f32 %v1286_v40, %v1268_v11  ;;  %v1306_v46 = vadd.f32 %v1286_v40, %v1270_v12 }
 0x1eb   : > { %v1143_v62 = vpop.f32.mrf.mxu0  ;;  %v1232_v63 = vpop.f32.mrf.mxu1  ;;  %v1319_v59 = vmax.f32 %v1303_v49, 0.0  ;;  %v1321_v60 = vmax.f32 %v1305_v50, 0.0 }
 0x1ec   : > { %v1272_v19 = vmul.f32 %v1255_v0, %v1143_v62  ;;  %v1274_v20 = vmul.f32 %v1255_v0, %v1232_v63  ;;  %v1307_v41 = vadd.f32 %v1291_v33, %v1271_v23  ;;  %v1309_v42 = vadd.f32 %v1291_v33, %v1273_v25  ;;  %v1340_v0 = vpop.permute.xlu0 %1339 }
 0x1ed   : > { %v1147_v1 = vpop.f32.mrf.mxu0  ;;  %v1236_v2 = vpop.f32.mrf.mxu1  ;;  %v1320_v57 = vmax.f32 %v1304_v45, 0.0  ;;  %v1322_v58 = vmax.f32 %v1306_v46, 0.0 }
 0x1ee   : > { %v1275_v14 = vmul.f32 %v1260_v56, %v1147_v1  ;;  %v1277_v15 = vmul.f32 %v1260_v56, %v1236_v2  ;;  %v1308_v36 = vadd.f32 %v1291_v33, %v1272_v19  ;;  %v1310_v37 = vadd.f32 %v1291_v33, %v1274_v20 }
 0x1ef   : > { %v1149_v3 = vpop.f32.mrf.mxu0  ;;  %v1238_v4 = vpop.f32.mrf.mxu1  ;;  %v1323_v55 = vmax.f32 %v1307_v41, 0.0 }
 0x1f0   : > { %v1276_v8 = vmul.f32 %v1260_v56, %v1149_v3  ;;  %v1278_v9 = vmul.f32 %v1260_v56, %v1238_v4  ;;  %v1311_v24 = vadd.f32 %v1296_v5, %v1275_v14  ;;  %v1313_v35 = vadd.f32 %v1296_v5, %v1277_v15 }
 0x1f1   : > { %v1153_v6 = vpop.f32.mrf.mxu0  ;;  %v1242_v7 = vpop.f32.mrf.mxu1  ;;  %v1326_v54 = vmax.f32 %v1310_v37, 0.0  ;;  %v1325_v56 = vmax.f32 %v1309_v42, 0.0 }
 0x1f2   : > { %v1279_v10 = vmul.f32 %v1265_v53, %v1153_v6  ;;  %v1281_v13 = vmul.f32 %v1265_v53, %v1242_v7  ;;  %v1312_v29 = vadd.f32 %v1296_v5, %v1276_v8  ;;  %v1314_v30 = vadd.f32 %v1296_v5, %v1278_v9 }
 0x1f3   : > { %v1155_v17 = vpop.f32.mrf.mxu0  ;;  %v1244_v18 = vpop.f32.mrf.mxu1  ;;  %v1327_v51 = vmax.f32 %v1311_v24, 0.0  ;;  %v1329_v52 = vmax.f32 %v1313_v35, 0.0 }
 0x1f4   : > { %v1280_v21 = vmul.f32 %v1265_v53, %v1155_v17  ;;  %v1282_v22 = vmul.f32 %v1265_v53, %v1244_v18  ;;  %v1315_v26 = vadd.f32 %v1301_v61, %v1279_v10  ;;  %v1317_v28 = vadd.f32 %v1301_v61, %v1281_v13 }
 0x1f5   : > { %v1328_v47 = vmax.f32 %v1312_v29, 0.0  ;;  %v1330_v48 = vmax.f32 %v1314_v30, 0.0  ;;  %v1324_v53 = vmax.f32 %v1308_v36, 0.0 }
 0x1f6   : > { %v1316_v31 = vadd.f32 %v1301_v61, %v1280_v21  ;;  %v1318_v27 = vadd.f32 %v1301_v61, %v1282_v22  ;;  %v1331_v43 = vmax.f32 %v1315_v26, 0.0  ;;  %v1333_v44 = vmax.f32 %v1317_v28, 0.0  ;;  %v1335_v61 = vld [vmem:[%s2140_s9] sm:$0x7] }
 0x1f8   : > { %v1332_v38 = vmax.f32 %v1316_v31, 0.0  ;;  %v1334_v39 = vmax.f32 %v1318_v27, 0.0 }
 0x1fa   : > { %1369 = vmatprep.subr.mxu0 %v1332_v38  ;;  %1440 = vmatprep.subr.mxu1 %v1334_v39 }
 0x1fb   : > { %1370 = vmatpush1.msra.mxu0 %v1331_v43  ;;  %1441 = vmatpush1.msra.mxu1 %v1333_v44 }
 0x1fc   : > { %1371 = vmatprep.subr.mxu0 %v1328_v47  ;;  %1442 = vmatprep.subr.mxu1 %v1330_v48 }
 0x1fd   : > { %1372 = vmatpush1.msra.mxu0 %v1327_v51  ;;  %1443 = vmatpush1.msra.mxu1 %v1329_v52 }
 0x1fe   : > { %1373 = vmatprep.subr.mxu0 %v1324_v53  ;;  %1444 = vmatprep.subr.mxu1 %v1326_v54 }
 0x1ff   : > { %1374 = vmatpush1.msra.mxu0 %v1323_v55  ;;  %1445 = vmatpush1.msra.mxu1 %v1325_v56 }
 0x200   : > { %1375 = vmatprep.subr.mxu0 %v1320_v57  ;;  %1446 = vmatprep.subr.mxu1 %v1322_v58 }
 0x201   : > { %1376 = vmatpush1.msra.mxu0 %v1319_v59  ;;  %1447 = vmatpush1.msra.mxu1 %v1321_v60 }
 0x202   : > { %1656 = vmatmul.mubr.msk.f32.vlgmr.msra.gmra.mxu0 %vm1056_vm4, %v1335_v61  ;;  %1657 = vmatmul.mubr.msk.f32.vlgmr.msra.gmra.mxu1 %vm1056_vm4, %v1335_v61 }
 0x2c2   : > { %v1411_v62 = vpop.f32.mrf.mxu0  ;;  %v1482_v63 = vpop.f32.mrf.mxu1 }
 0x2c3   : > { %v1412_v3 = vadd.f32 %v1411_v62, %v1340_v0  ;;  %v1483_v4 = vadd.f32 %v1482_v63, %v1340_v0 }
 0x2c4   : > { %v1413_v1 = vpop.f32.mrf.mxu0  ;;  %v1484_v2 = vpop.f32.mrf.mxu1 }
 0x2c5   : > { %v1414_v5 = vadd.f32 %v1413_v1, %v1340_v0  ;;  %v1485_v6 = vadd.f32 %v1484_v2, %v1340_v0 }
 0x2c7   : > { %v1491_v7 = vcombine.low %v1412_v3, %v1414_v5  ;;  %v1492_v16 = vcombine.low %v1483_v4, %v1485_v6 }
 0x2c9   : > { %1495 = vst [vmem:[%s499_s28] sm:$0x77] %v1491_v7  ;;  %1496 = vst [vmem:[%s499_s28 + $0x8] sm:$0x77] %v1492_v16 }
 0x2ca PF: > { %s21_s23 = sadd.s32 1, %s1776_s23   ;;  %s2149_s13 = sld [smem:[#allocation3_spill]] }
 0x2cb   : > { %p18_p12 = scmp.ge.s32.totalorder %s21_s23, 6   ;;  %s2150_s29 = sld [smem:[#allocation4_spill]] }
 0x2cc   : > { %s2151_s17 = smov %s1756_s18  ;;  %s2152_s18 = smov %s1892_s30 }
 0x2cd   : > { %s2153_s19 = smov %s1768_s21  ;;  %s2154_s20 = smov %s1772_s22 }
 0x2ce   :  { %20 = sbr.rel (!%p18_p12) target bundleno = 6 (0x6), region = 125 }
 0x2d0   : > { %s2155_s21 = smov %s2149_s13 }
 0x2d1   : > { %s2156_s22 = smov %s2150_s29 }

</bundles_post_ra>
